<compile_context>
chip_gen: v6e
topology: v6e:2x2x1
jax: 0.10.0
libtpu: 0.0.40
codegen_flags: <defaults>
</compile_context>

<pallas_src>
import functools

import numpy as np
import jax
import jax.numpy as jnp
from jax import lax
from jax.experimental import pallas as pl
from jax.experimental.pallas import tpu as pltpu

F32 = jnp.float32


# --------------------------------------------------------------------- geometry
def _tap_shifts(H, W):
    """Roll amount along the flattened token axis (n = h*W + w) for each 3x3 tap.

    roll(x, s, axis=-1)[n] == x[(n - s) mod N], so with s = (-off) mod N the
    rolled vector at position n holds x[n + off], off = dy*W + dx.
    """
    N = H * W
    shifts = []
    for ky in range(3):
        for kx in range(3):
            off = (ky - 1) * W + (kx - 1)
            shifts.append((-off) % N)
    return shifts


def _tap_masks(H, W):
    """(9, N) masks: 1.0 where tap (dy,dx) stays inside the HxW image.

    Combined with the circular roll this reproduces zero padding exactly and
    also prevents any cross-image read when several batch images share a block.
    """
    N = H * W
    h = np.arange(N) // W
    w = np.arange(N) % W
    masks = np.zeros((9, N), np.float32)
    k = 0
    for ky in range(3):
        for kx in range(3):
            dy, dx = ky - 1, kx - 1
            ok = (h + dy >= 0) & (h + dy < H) & (w + dx >= 0) & (w + dx < W)
            masks[k] = ok.astype(np.float32)
            k += 1
    return masks


# ----------------------------------------------------------------------- kernel
def _make_kernel(BT, shifts):
    def kernel(x_ref, coeff_ref, pw_ref, o_ref):
        # coeff[k] = depthwise weight (per channel) * border mask (per token),
        # folded offline -> one multiply-add per tap.
        coeff = [coeff_ref[k] for k in range(9)]           # each (Cin, N) f32
        pw = pw_ref[...].astype(jnp.bfloat16)              # (Cout, Cin)
        for b in range(BT):                                # static unroll, BT small
            xb = x_ref[b]                                  # (Cin, N) f32
            acc = coeff[4] * xb                            # center tap: shift == 0
            for k in range(9):
                if k == 4:
                    continue
                acc = acc + coeff[k] * pltpu.roll(xb, shifts[k], axis=1)
            # pointwise 1x1 conv: (Cout, Cin) @ (Cin, N) on the MXU, f32 accumulate
            o_ref[b] = jnp.dot(pw, acc.astype(jnp.bfloat16),
                               preferred_element_type=jnp.float32)
    return kernel


def _pick_batch_tile(B, Cin, Cout, N, budget_bytes=8 * 1024 * 1024):
    """Largest divisor of B whose per-step working set fits a small VMEM budget."""
    bt = 1
    for cand in range(1, B + 1):
        if B % cand:
            continue
        est = 4 * (2 * cand * Cin * N        # x block (double buffered)
                   + 2 * cand * Cout * N     # out block (double buffered)
                   + 9 * Cin * N             # resident coefficients
                   + 4 * cand * Cin * N)     # headroom for rolled temps / acc
        if est <= budget_bytes:
            bt = cand
    return bt


# ---------------------------------------------------------------------- wrapper
def dwconv2d_forward(x_nchw, dw_w, pw_w):
    """x: (B, Cin, H, W) f32, dw_w: (Cin, 3, 3), pw_w: (Cout, Cin) -> (B, Cout, H, W)."""
    B, Cin, H, W = x_nchw.shape
    Cout = pw_w.shape[0]
    N = H * W

    x3 = x_nchw.reshape(B, Cin, N)                       # free contiguous reshape
    masks = jnp.asarray(_tap_masks(H, W))                # (9, N), static geometry
    # Fold depthwise weights + border masks offline -> (9, Cin, N)
    coeff = dw_w.reshape(Cin, 9).T[:, :, None] * masks[:, None, :]

    shifts = _tap_shifts(H, W)
    BT = _pick_batch_tile(B, Cin, Cout, N)
    grid = (B // BT,)

    out3 = pl.pallas_call(
        _make_kernel(BT, shifts),
        out_shape=jax.ShapeDtypeStruct((B, Cout, N), F32),
        grid=grid,
        in_specs=[
            pl.BlockSpec((BT, Cin, N), lambda i: (i, 0, 0)),
            pl.BlockSpec((9, Cin, N), lambda i: (0, 0, 0)),   # constant block: resident
            pl.BlockSpec((Cout, Cin), lambda i: (0, 0)),
        ],
        out_specs=pl.BlockSpec((BT, Cout, N), lambda i: (i, 0, 0)),
        compiler_params=pltpu.CompilerParams(
            dimension_semantics=("parallel",)),
    )(x3, coeff, pw_w)

    return out3.reshape(B, Cout, H, W)                   # free contiguous reshape


# -------------------------------------------------------------------- reference
def dwconv2d_reference(x_nchw, dw_w, pw_w):
    """Pure-JAX reference matching torch: depthwise 3x3 (groups=Cin) -> 1x1."""
    Cin = x_nchw.shape[1]
    dw = lax.conv_general_dilated(
        x_nchw, dw_w.reshape(Cin, 1, 3, 3), (1, 1), "SAME",
        dimension_numbers=("NCHW", "OIHW", "NCHW"),
        feature_group_count=Cin, precision=lax.Precision.HIGHEST)
    return jnp.einsum("oc,bchw->bohw", pw_w, dw, precision=lax.Precision.HIGHEST)


# ------------------------------------------------------------------------- main
if __name__ == "__main__":
    B, Cin, Cout, H, W = 2, 4, 8, 16, 16

    key = jax.random.PRNGKey(0)
    kx, kd, kp = jax.random.split(key, 3)
    x = jax.random.normal(kx, (B, Cin, H, W), dtype=F32)
    # kaiming_uniform_(a=sqrt(5)) == U(-1/sqrt(fan_in), 1/sqrt(fan_in))
    dw_w = jax.random.uniform(kd, (Cin, 3, 3), F32, -1.0 / 3.0, 1.0 / 3.0)
    pw_bound = 1.0 / float(np.sqrt(Cin))
    pw_w = jax.random.uniform(kp, (Cout, Cin), F32, -pw_bound, pw_bound)

    fwd = jax.jit(dwconv2d_forward)
    out = fwd(x, dw_w, pw_w)
    jax.block_until_ready(out)

    assert out.shape == (B, Cout, H, W), out.shape
    assert bool(jnp.all(jnp.isfinite(out)))

    ref = dwconv2d_reference(x, dw_w, pw_w)
    max_err = float(jnp.max(jnp.abs(out - ref)))
    # bf16 MXU operands with f32 accumulation -> small rounding error vs f32 ref
    assert max_err < 2e-2, f"max abs error {max_err}"

    print("KERNEL_OK")
</pallas_src>

<mosaic_0001>
module attributes {stable_mosaic.version = 11 : i64} {
  func.func @kernel(%arg0: i32, %arg1: memref<2x4x256xf32, #tpu.memory_space<vmem>>, %arg2: memref<9x4x256xf32, #tpu.memory_space<vmem>>, %arg3: memref<8x4xf32, #tpu.memory_space<vmem>>, %arg4: memref<2x8x256xf32, #tpu.memory_space<vmem>>) attributes {dimension_semantics = [#tpu.dimension_semantics<parallel>], iteration_bounds = array<i64: 1>, scalar_prefetch = 0 : i64, scratch_operands = 0 : i64, tpu.core_type = #tpu.core_type<tc>, window_params = [{transform_indices = @transform_0, window_bounds = array<i64: 2, 4, 256>}, {pipeline_mode = #tpu.pipeline_mode<synchronous>, transform_indices = @transform_1, window_bounds = array<i64: 9, 4, 256>}, {pipeline_mode = #tpu.pipeline_mode<synchronous>, transform_indices = @transform_2, window_bounds = array<i64: 8, 4>}, {transform_indices = @transform_3, window_bounds = array<i64: 2, 8, 256>}]} {
    %c0 = arith.constant 0 : index
    %c0_0 = arith.constant 0 : index
    %c0_1 = arith.constant 0 : index
    %0 = vector.load %arg2[%c0, %c0_0, %c0_1] : memref<9x4x256xf32, #tpu.memory_space<vmem>>, vector<1x4x256xf32>
    %1 = vector.shape_cast %0 : vector<1x4x256xf32> to vector<4x256xf32>
    %c1 = arith.constant 1 : index
    %c0_2 = arith.constant 0 : index
    %c0_3 = arith.constant 0 : index
    %2 = vector.load %arg2[%c1, %c0_2, %c0_3] : memref<9x4x256xf32, #tpu.memory_space<vmem>>, vector<1x4x256xf32>
    %3 = vector.shape_cast %2 : vector<1x4x256xf32> to vector<4x256xf32>
    %c2 = arith.constant 2 : index
    %c0_4 = arith.constant 0 : index
    %c0_5 = arith.constant 0 : index
    %4 = vector.load %arg2[%c2, %c0_4, %c0_5] : memref<9x4x256xf32, #tpu.memory_space<vmem>>, vector<1x4x256xf32>
    %5 = vector.shape_cast %4 : vector<1x4x256xf32> to vector<4x256xf32>
    %c3 = arith.constant 3 : index
    %c0_6 = arith.constant 0 : index
    %c0_7 = arith.constant 0 : index
    %6 = vector.load %arg2[%c3, %c0_6, %c0_7] : memref<9x4x256xf32, #tpu.memory_space<vmem>>, vector<1x4x256xf32>
    %7 = vector.shape_cast %6 : vector<1x4x256xf32> to vector<4x256xf32>
    %c4 = arith.constant 4 : index
    %c0_8 = arith.constant 0 : index
    %c0_9 = arith.constant 0 : index
    %8 = vector.load %arg2[%c4, %c0_8, %c0_9] : memref<9x4x256xf32, #tpu.memory_space<vmem>>, vector<1x4x256xf32>
    %9 = vector.shape_cast %8 : vector<1x4x256xf32> to vector<4x256xf32>
    %c5 = arith.constant 5 : index
    %c0_10 = arith.constant 0 : index
    %c0_11 = arith.constant 0 : index
    %10 = vector.load %arg2[%c5, %c0_10, %c0_11] : memref<9x4x256xf32, #tpu.memory_space<vmem>>, vector<1x4x256xf32>
    %11 = vector.shape_cast %10 : vector<1x4x256xf32> to vector<4x256xf32>
    %c6 = arith.constant 6 : index
    %c0_12 = arith.constant 0 : index
    %c0_13 = arith.constant 0 : index
    %12 = vector.load %arg2[%c6, %c0_12, %c0_13] : memref<9x4x256xf32, #tpu.memory_space<vmem>>, vector<1x4x256xf32>
    %13 = vector.shape_cast %12 : vector<1x4x256xf32> to vector<4x256xf32>
    %c7 = arith.constant 7 : index
    %c0_14 = arith.constant 0 : index
    %c0_15 = arith.constant 0 : index
    %14 = vector.load %arg2[%c7, %c0_14, %c0_15] : memref<9x4x256xf32, #tpu.memory_space<vmem>>, vector<1x4x256xf32>
    %15 = vector.shape_cast %14 : vector<1x4x256xf32> to vector<4x256xf32>
    %c8 = arith.constant 8 : index
    %c0_16 = arith.constant 0 : index
    %c0_17 = arith.constant 0 : index
    %16 = vector.load %arg2[%c8, %c0_16, %c0_17] : memref<9x4x256xf32, #tpu.memory_space<vmem>>, vector<1x4x256xf32>
    %17 = vector.shape_cast %16 : vector<1x4x256xf32> to vector<4x256xf32>
    %c0_18 = arith.constant 0 : index
    %c0_19 = arith.constant 0 : index
    %18 = vector.load %arg3[%c0_18, %c0_19] : memref<8x4xf32, #tpu.memory_space<vmem>>, vector<8x4xf32>
    %19 = arith.truncf %18 : vector<8x4xf32> to vector<8x4xbf16>
    %c0_20 = arith.constant 0 : index
    %c0_21 = arith.constant 0 : index
    %c0_22 = arith.constant 0 : index
    %20 = vector.load %arg1[%c0_20, %c0_21, %c0_22] : memref<2x4x256xf32, #tpu.memory_space<vmem>>, vector<1x4x256xf32>
    %21 = vector.shape_cast %20 : vector<1x4x256xf32> to vector<4x256xf32>
    %22 = arith.mulf %9, %21 : vector<4x256xf32>
    %c17_i32 = arith.constant 17 : i32
    %23 = tpu.dynamic_rotate %21 by %c17_i32 dim 1 : vector<4x256xf32>, i32 -> vector<4x256xf32>
    %24 = arith.mulf %1, %23 : vector<4x256xf32>
    %25 = arith.addf %22, %24 : vector<4x256xf32>
    %c16_i32 = arith.constant 16 : i32
    %26 = tpu.dynamic_rotate %21 by %c16_i32 dim 1 : vector<4x256xf32>, i32 -> vector<4x256xf32>
    %27 = arith.mulf %3, %26 : vector<4x256xf32>
    %28 = arith.addf %25, %27 : vector<4x256xf32>
    %c15_i32 = arith.constant 15 : i32
    %29 = tpu.dynamic_rotate %21 by %c15_i32 dim 1 : vector<4x256xf32>, i32 -> vector<4x256xf32>
    %30 = arith.mulf %5, %29 : vector<4x256xf32>
    %31 = arith.addf %28, %30 : vector<4x256xf32>
    %c1_i32 = arith.constant 1 : i32
    %32 = tpu.dynamic_rotate %21 by %c1_i32 dim 1 : vector<4x256xf32>, i32 -> vector<4x256xf32>
    %33 = arith.mulf %7, %32 : vector<4x256xf32>
    %34 = arith.addf %31, %33 : vector<4x256xf32>
    %c255_i32 = arith.constant 255 : i32
    %35 = tpu.dynamic_rotate %21 by %c255_i32 dim 1 : vector<4x256xf32>, i32 -> vector<4x256xf32>
    %36 = arith.mulf %11, %35 : vector<4x256xf32>
    %37 = arith.addf %34, %36 : vector<4x256xf32>
    %c241_i32 = arith.constant 241 : i32
    %38 = tpu.dynamic_rotate %21 by %c241_i32 dim 1 : vector<4x256xf32>, i32 -> vector<4x256xf32>
    %39 = arith.mulf %13, %38 : vector<4x256xf32>
    %40 = arith.addf %37, %39 : vector<4x256xf32>
    %c240_i32 = arith.constant 240 : i32
    %41 = tpu.dynamic_rotate %21 by %c240_i32 dim 1 : vector<4x256xf32>, i32 -> vector<4x256xf32>
    %42 = arith.mulf %15, %41 : vector<4x256xf32>
    %43 = arith.addf %40, %42 : vector<4x256xf32>
    %c239_i32 = arith.constant 239 : i32
    %44 = tpu.dynamic_rotate %21 by %c239_i32 dim 1 : vector<4x256xf32>, i32 -> vector<4x256xf32>
    %45 = arith.mulf %17, %44 : vector<4x256xf32>
    %46 = arith.addf %43, %45 : vector<4x256xf32>
    %47 = arith.truncf %46 : vector<4x256xf32> to vector<4x256xbf16>
    %cst = arith.constant dense<0.000000e+00> : vector<8x256xf32>
    %48 = tpu.matmul %19, %47, %cst {dimension_numbers = #tpu.dot_dimension_numbers<[1], [0], [0], [1], [0, 0, 1, 1], [], []>} : vector<8x4xbf16>, vector<4x256xbf16>, vector<8x256xf32> -> vector<8x256xf32>
    %c0_23 = arith.constant 0 : index
    %c0_24 = arith.constant 0 : index
    %c0_25 = arith.constant 0 : index
    %49 = vector.load %arg4[%c0_23, %c0_24, %c0_25] : memref<2x8x256xf32, #tpu.memory_space<vmem>>, vector<1x8x256xf32>
    %50 = vector.shape_cast %49 : vector<1x8x256xf32> to vector<8x256xf32>
    %51 = vector.shape_cast %48 : vector<8x256xf32> to vector<1x8x256xf32>
    tpu.vector_store %arg4[%c0_23, %c0_24, %c0_25], %51 {strides = array<i32>} : memref<2x8x256xf32, #tpu.memory_space<vmem>>, vector<1x8x256xf32>,
    %c1_26 = arith.constant 1 : index
    %c0_27 = arith.constant 0 : index
    %c0_28 = arith.constant 0 : index
    %52 = vector.load %arg1[%c1_26, %c0_27, %c0_28] : memref<2x4x256xf32, #tpu.memory_space<vmem>>, vector<1x4x256xf32>
    %53 = vector.shape_cast %52 : vector<1x4x256xf32> to vector<4x256xf32>
    %54 = arith.mulf %9, %53 : vector<4x256xf32>
    %c17_i32_29 = arith.constant 17 : i32
    %55 = tpu.dynamic_rotate %53 by %c17_i32_29 dim 1 : vector<4x256xf32>, i32 -> vector<4x256xf32>
    %56 = arith.mulf %1, %55 : vector<4x256xf32>
    %57 = arith.addf %54, %56 : vector<4x256xf32>
    %c16_i32_30 = arith.constant 16 : i32
    %58 = tpu.dynamic_rotate %53 by %c16_i32_30 dim 1 : vector<4x256xf32>, i32 -> vector<4x256xf32>
    %59 = arith.mulf %3, %58 : vector<4x256xf32>
    %60 = arith.addf %57, %59 : vector<4x256xf32>
    %c15_i32_31 = arith.constant 15 : i32
    %61 = tpu.dynamic_rotate %53 by %c15_i32_31 dim 1 : vector<4x256xf32>, i32 -> vector<4x256xf32>
    %62 = arith.mulf %5, %61 : vector<4x256xf32>
    %63 = arith.addf %60, %62 : vector<4x256xf32>
    %c1_i32_32 = arith.constant 1 : i32
    %64 = tpu.dynamic_rotate %53 by %c1_i32_32 dim 1 : vector<4x256xf32>, i32 -> vector<4x256xf32>
    %65 = arith.mulf %7, %64 : vector<4x256xf32>
    %66 = arith.addf %63, %65 : vector<4x256xf32>
    %c255_i32_33 = arith.constant 255 : i32
    %67 = tpu.dynamic_rotate %53 by %c255_i32_33 dim 1 : vector<4x256xf32>, i32 -> vector<4x256xf32>
    %68 = arith.mulf %11, %67 : vector<4x256xf32>
    %69 = arith.addf %66, %68 : vector<4x256xf32>
    %c241_i32_34 = arith.constant 241 : i32
    %70 = tpu.dynamic_rotate %53 by %c241_i32_34 dim 1 : vector<4x256xf32>, i32 -> vector<4x256xf32>
    %71 = arith.mulf %13, %70 : vector<4x256xf32>
    %72 = arith.addf %69, %71 : vector<4x256xf32>
    %c240_i32_35 = arith.constant 240 : i32
    %73 = tpu.dynamic_rotate %53 by %c240_i32_35 dim 1 : vector<4x256xf32>, i32 -> vector<4x256xf32>
    %74 = arith.mulf %15, %73 : vector<4x256xf32>
    %75 = arith.addf %72, %74 : vector<4x256xf32>
    %c239_i32_36 = arith.constant 239 : i32
    %76 = tpu.dynamic_rotate %53 by %c239_i32_36 dim 1 : vector<4x256xf32>, i32 -> vector<4x256xf32>
    %77 = arith.mulf %17, %76 : vector<4x256xf32>
    %78 = arith.addf %75, %77 : vector<4x256xf32>
    %79 = arith.truncf %78 : vector<4x256xf32> to vector<4x256xbf16>
    %cst_37 = arith.constant dense<0.000000e+00> : vector<8x256xf32>
    %80 = tpu.matmul %19, %79, %cst_37 {dimension_numbers = #tpu.dot_dimension_numbers<[1], [0], [0], [1], [0, 0, 1, 1], [], []>} : vector<8x4xbf16>, vector<4x256xbf16>, vector<8x256xf32> -> vector<8x256xf32>
    %c1_38 = arith.constant 1 : index
    %c0_39 = arith.constant 0 : index
    %c0_40 = arith.constant 0 : index
    %81 = vector.load %arg4[%c1_38, %c0_39, %c0_40] : memref<2x8x256xf32, #tpu.memory_space<vmem>>, vector<1x8x256xf32>
    %82 = vector.shape_cast %81 : vector<1x8x256xf32> to vector<8x256xf32>
    %83 = vector.shape_cast %80 : vector<8x256xf32> to vector<1x8x256xf32>
    tpu.vector_store %arg4[%c1_38, %c0_39, %c0_40], %83 {strides = array<i32>} : memref<2x8x256xf32, #tpu.memory_space<vmem>>, vector<1x8x256xf32>,
    return
  }
  func.func @transform_0(%arg0: i32) -> (i32, i32, i32) {
    %c0_i32 = arith.constant 0 : i32
    %c0_i32_0 = arith.constant 0 : i32
    %c0_i32_1 = arith.constant 0 : i32
    return %arg0, %c0_i32, %c0_i32_0 : i32, i32, i32
  }
  func.func @transform_1(%arg0: i32) -> (i32, i32, i32) {
    %c0_i32 = arith.constant 0 : i32
    %c0_i32_0 = arith.constant 0 : i32
    %c0_i32_1 = arith.constant 0 : i32
    %c0_i32_2 = arith.constant 0 : i32
    return %c0_i32, %c0_i32_0, %c0_i32_1 : i32, i32, i32
  }
  func.func @transform_2(%arg0: i32) -> (i32, i32) {
    %c0_i32 = arith.constant 0 : i32
    %c0_i32_0 = arith.constant 0 : i32
    %c0_i32_1 = arith.constant 0 : i32
    return %c0_i32, %c0_i32_0 : i32, i32
  }
  func.func @transform_3(%arg0: i32) -> (i32, i32, i32) {
    %c0_i32 = arith.constant 0 : i32
    %c0_i32_0 = arith.constant 0 : i32
    %c0_i32_1 = arith.constant 0 : i32
    return %arg0, %c0_i32, %c0_i32_0 : i32, i32, i32
  }
}

</mosaic_0001>

<bundles_post_ra>
// kernel: dwconv2d_forward.1
= control target key start
LH: loop header
LB: loop body
LE: loop exit
PB: predicated region body
PF: predicated region fallthrough
CT: control target
= control target key end

     0   :  { %s391_s16 = smov 17   ;;  %s392_s17 = smov 16   ;;  %v399_v4 = vmov 0   ;;  %v43_v19 = vlaneseq  ;;  %vm154_vm8 = vcmask 1041408   ;;  %vm150_vm9 = vcmask 31744   ;;  %s560_s0 = inlined_call_operand.vmem [shape: f32[2,4,256], index: 0, kind: input, shape index: {}]   ;;  %s561_s1 = inlined_call_operand.vmem [shape: f32[9,4,256], index: 1, kind: input, shape index: {}]   ;;  %s562_s2 = inlined_call_operand.vmem [shape: f32[8,4], index: 2, kind: input, shape index: {}]   ;;  %s563_s3 = inlined_call_operand.vmem [shape: f32[2,8,256], index: 3, kind: output, shape index: {}]  }
   0x1   :  { %v423_v0 = vld [vmem:[%s560_s0 + $0x8] sm:$0xff]  ;;  %v428_v1 = vld [vmem:[%s560_s0] sm:$0xff]  ;;  %s393_s0 = smov 15   ;;  %s394_s18 = smov 1   ;;  %193 = vmatprep.mubr.bf16.mxu0 %v399_v4  ;;  %349 = vmatprep.mubr.bf16.mxu1 %v399_v4  ;;  %v366_v56 = vld [vmem:[%s561_s1 + $0x10] sm:$0xff] }
   0x2   :  { %210 = vrot.lane.b32.xlu1 %v423_v0, %s391_s16  ;;  %39 = vrot.lane.b32.xlu0 %v428_v1, %s391_s16  ;;  %v208_v2 = vcombine.high %v423_v0, %v423_v0  ;;  %v37_v3 = vcombine.high %v428_v1, %v428_v1  ;;  %s395_s19 = smov 127   ;;  %s396_s20 = smov 113   ;;  %v450_v22 = vand.u32 127, %v43_v19  ;;  %v368_v29 = vld [vmem:[%s561_s1 + $0x20] sm:$0xff]  ;;  %v365_v45 = vld [vmem:[%s561_s1 + $0x8] sm:$0xff] }
   0x3   :  { %s397_s21 = smov 112   ;;  %s398_s22 = smov 111   ;;  %v15_v37 = vld [vmem:[%s561_s1] sm:$0xff]  ;;  %v35_v43 = vmul.f32 %v368_v29, %v428_v1  ;;  %v206_v55 = vmul.f32 %v423_v0, %v368_v29  ;;  %v367_v63 = vld [vmem:[%s561_s1 + $0x18] sm:$0xff] }
   0x4   :  { %vm45_vm0 = vcmp.lt.s32.totalorder %v450_v22, 17  ;;  %vm58_vm1 = vcmp.lt.s32.totalorder %v450_v22, 16  ;;  %vm71_vm2 = vcmp.lt.s32.totalorder %v450_v22, 15  ;;  %vm84_vm3 = vcmp.lt.s32.totalorder %v450_v22, 1 }
   0x5   :  { %vm97_vm4 = vcmp.lt.s32.totalorder %v450_v22, 127  ;;  %vm110_vm5 = vcmp.lt.s32.totalorder %v450_v22, 113  ;;  %vm123_vm6 = vcmp.lt.s32.totalorder %v450_v22, 112  ;;  %vm136_vm7 = vcmp.lt.s32.totalorder %v450_v22, 111 }
   0x6   :  { %212 = vrot.lane.b32.xlu1 %v208_v2, %s391_s16  ;;  %41 = vrot.lane.b32.xlu0 %v37_v3, %s391_s16 }
   0xa   :  { %56 = vrot.lane.b32.xlu1 %v37_v3, %s392_s17  ;;  %54 = vrot.lane.b32.xlu0 %v428_v1, %s392_s17 }
   0xe   :  { %224 = vrot.lane.b32.xlu1 %v208_v2, %s392_s17  ;;  %222 = vrot.lane.b32.xlu0 %v423_v0, %s392_s17 }
  0x12   :  { %69 = vrot.lane.b32.xlu1 %v37_v3, %s393_s0  ;;  %67 = vrot.lane.b32.xlu0 %v428_v1, %s393_s0 }
  0x16   :  { %236 = vrot.lane.b32.xlu1 %v208_v2, %s393_s0  ;;  %234 = vrot.lane.b32.xlu0 %v423_v0, %s393_s0 }
  0x1a   :  { %82 = vrot.lane.b32.xlu1 %v37_v3, %s394_s18  ;;  %80 = vrot.lane.b32.xlu0 %v428_v1, %s394_s18 }
  0x1e   :  { %248 = vrot.lane.b32.xlu1 %v208_v2, %s394_s18  ;;  %246 = vrot.lane.b32.xlu0 %v423_v0, %s394_s18 }
  0x22   :  { %95 = vrot.lane.b32.xlu1 %v37_v3, %s395_s19  ;;  %93 = vrot.lane.b32.xlu0 %v428_v1, %s395_s19 }
  0x26   :  { %260 = vrot.lane.b32.xlu1 %v208_v2, %s395_s19  ;;  %258 = vrot.lane.b32.xlu0 %v423_v0, %s395_s19 }
  0x2a   :  { %108 = vrot.lane.b32.xlu1 %v37_v3, %s396_s20  ;;  %106 = vrot.lane.b32.xlu0 %v428_v1, %s396_s20 }
  0x2e   :  { %272 = vrot.lane.b32.xlu1 %v208_v2, %s396_s20  ;;  %270 = vrot.lane.b32.xlu0 %v423_v0, %s396_s20 }
  0x32   :  { %121 = vrot.lane.b32.xlu1 %v37_v3, %s397_s21  ;;  %119 = vrot.lane.b32.xlu0 %v428_v1, %s397_s21 }
  0x36   :  { %284 = vrot.lane.b32.xlu1 %v208_v2, %s397_s21  ;;  %282 = vrot.lane.b32.xlu0 %v423_v0, %s397_s21 }
  0x3a   :  { %134 = vrot.lane.b32.xlu1 %v37_v3, %s398_s22  ;;  %132 = vrot.lane.b32.xlu0 %v428_v1, %s398_s22 }
  0x3e   :  { %296 = vrot.lane.b32.xlu1 %v208_v2, %s398_s22  ;;  %294 = vrot.lane.b32.xlu0 %v423_v0, %s398_s22 }
  0x74   :  { %v211_v5 = vpop.permute.xlu1 %210  ;;  %v40_v6 = vpop.permute.xlu0 %39 }
  0x78   :  { %v213_v7 = vpop.permute.xlu1 %212  ;;  %v42_v8 = vpop.permute.xlu0 %41 }
  0x79   :  { %v46_v27 = vsel %vm45_vm0, %v40_v6, %v42_v8  ;;  %v47_v28 = vsel %vm45_vm0, %v42_v8, %v40_v6  ;;  %v214_v30 = vsel %vm45_vm0, %v211_v5, %v213_v7  ;;  %v215_v31 = vsel %vm45_vm0, %v213_v7, %v211_v5 }
  0x7a   :  { %v50_v34 = vcombine.low %v47_v28, %v46_v27  ;;  %v218_v42 = vcombine.low %v215_v31, %v214_v30 }
  0x7c   :  { %v57_v9 = vpop.permute.xlu1 %56  ;;  %v55_v10 = vpop.permute.xlu0 %54  ;;  %v52_v50 = vmul.f32 %v50_v34, %v15_v37  ;;  %v220_v59 = vmul.f32 %v218_v42, %v15_v37 }
  0x7d   :  { %v59_v32 = vsel %vm58_vm1, %v55_v10, %v57_v9  ;;  %v60_v33 = vsel %vm58_vm1, %v57_v9, %v55_v10  ;;  %v369_v10 = vld [vmem:[%s561_s1 + $0x28] sm:$0xff] }
  0x7e   :  { %v63_v44 = vcombine.low %v60_v33, %v59_v32  ;;  %v53_v4 = vadd.f32 %v52_v50, %v35_v43  ;;  %v221_v19 = vadd.f32 %v220_v59, %v206_v55  ;;  %v371_v32 = vld [vmem:[%s561_s1 + $0x38] sm:$0xff] }
  0x80   :  { %v225_v11 = vpop.permute.xlu1 %224  ;;  %v223_v12 = vpop.permute.xlu0 %222  ;;  %v65_v60 = vmul.f32 %v365_v45, %v63_v44 }
  0x81   :  { %v226_v38 = vsel %vm58_vm1, %v223_v12, %v225_v11  ;;  %v227_v39 = vsel %vm58_vm1, %v225_v11, %v223_v12 }
  0x82   :  { %v230_v51 = vcombine.low %v227_v39, %v226_v38 }
  0x84   :  { %v70_v13 = vpop.permute.xlu1 %69  ;;  %v68_v14 = vpop.permute.xlu0 %67  ;;  %v232_v5 = vmul.f32 %v365_v45, %v230_v51 }
  0x85   :  { %v72_v40 = vsel %vm71_vm2, %v68_v14, %v70_v13  ;;  %v73_v41 = vsel %vm71_vm2, %v70_v13, %v68_v14 }
  0x86   :  { %v76_v52 = vcombine.low %v73_v41, %v72_v40  ;;  %v233_v31 = vadd.f32 %v232_v5, %v221_v19 }
  0x88   :  { %v237_v15 = vpop.permute.xlu1 %236  ;;  %v235_v16 = vpop.permute.xlu0 %234  ;;  %v78_v6 = vmul.f32 %v366_v56, %v76_v52 }
  0x89   :  { %v238_v46 = vsel %vm71_vm2, %v235_v16, %v237_v15  ;;  %v239_v47 = vsel %vm71_vm2, %v237_v15, %v235_v16  ;;  %v66_v15 = vadd.f32 %v65_v60, %v53_v4  ;;  %v32_v4 = vld [vmem:[%s562_s2] sm:$0xff] }
  0x8a   :  { %v242_v61 = vcombine.low %v239_v47, %v238_v46  ;;  %v372_v46 = vld [vmem:[%s561_s1 + $0x40] sm:$0xff] }
  0x8c   :  { %v83_v17 = vpop.permute.xlu1 %82  ;;  %v81_v18 = vpop.permute.xlu0 %80 }
  0x8d   :  { %v85_v48 = vsel %vm84_vm3, %v81_v18, %v83_v17  ;;  %v86_v49 = vsel %vm84_vm3, %v83_v17, %v81_v18 }
  0x8e   :  { %v89_v62 = vcombine.low %v86_v49, %v85_v48 }
  0x90   :  { %v249_v20 = vpop.permute.xlu1 %248  ;;  %v247_v21 = vpop.permute.xlu0 %246  ;;  %v91_v16 = vmul.f32 %v367_v63, %v89_v62 }
  0x91   :  { %v250_v0 = vsel %vm84_vm3, %v247_v21, %v249_v20  ;;  %v251_v1 = vsel %vm84_vm3, %v249_v20, %v247_v21  ;;  %v244_v20 = vmul.f32 %v366_v56, %v242_v61  ;;  %v370_v21 = vld [vmem:[%s561_s1 + $0x30] sm:$0xff] }
  0x92   :  { %v254_v17 = vcombine.low %v251_v1, %v250_v0 }
  0x93   :  { %v245_v39 = vadd.f32 %v244_v20, %v233_v31 }
  0x94   :  { %v96_v23 = vpop.permute.xlu1 %95  ;;  %v94_v24 = vpop.permute.xlu0 %93 }
  0x95   :  { %v98_v57 = vsel %vm97_vm4, %v94_v24, %v96_v23  ;;  %v99_v58 = vsel %vm97_vm4, %v96_v23, %v94_v24 }
  0x96   :  { %v102_v7 = vcombine.low %v98_v57, %v99_v58 }
  0x98   :  { %v261_v25 = vpop.permute.xlu1 %260  ;;  %v259_v26 = vpop.permute.xlu0 %258 }
  0x99   :  { %v262_v11 = vsel %vm97_vm4, %v259_v26, %v261_v25  ;;  %v263_v12 = vsel %vm97_vm4, %v261_v25, %v259_v26  ;;  %v79_v25 = vadd.f32 %v78_v6, %v66_v15  ;;  %v104_v26 = vmul.f32 %v369_v10, %v102_v7 }
  0x9a   :  { %v266_v27 = vcombine.low %v262_v11, %v263_v12 }
  0x9c   :  { %v109_v35 = vpop.permute.xlu1 %108  ;;  %v107_v36 = vpop.permute.xlu0 %106  ;;  %v268_v41 = vmul.f32 %v369_v10, %v266_v27 }
  0x9d   :  { %v111_v2 = vsel %vm110_vm5, %v107_v36, %v109_v35  ;;  %v112_v3 = vsel %vm110_vm5, %v109_v35, %v107_v36  ;;  %v92_v35 = vadd.f32 %v91_v16, %v79_v25  ;;  %v256_v36 = vmul.f32 %v367_v63, %v254_v17 }
  0x9e   :  { %v115_v18 = vcombine.low %v111_v2, %v112_v3 }
  0x9f   :  { %v105_v40 = vadd.f32 %v104_v26, %v92_v35  ;;  %v257_v49 = vadd.f32 %v256_v36, %v245_v39 }
  0xa0   :  { %v273_v53 = vpop.permute.xlu1 %272  ;;  %v271_v54 = vpop.permute.xlu0 %270  ;;  %v117_v37 = vmul.f32 %v370_v21, %v115_v18 }
  0xa1   :  { %v274_v23 = vsel %vm110_vm5, %v271_v54, %v273_v53  ;;  %v275_v24 = vsel %vm110_vm5, %v273_v53, %v271_v54  ;;  %v269_v53 = vadd.f32 %v268_v41, %v257_v49 }
  0xa2   :  { %v278_v38 = vcombine.low %v274_v23, %v275_v24  ;;  %v118_v50 = vadd.f32 %v117_v37, %v105_v40 }
  0xa4   :  { %v122_v8 = vpop.permute.xlu1 %121  ;;  %v120_v9 = vpop.permute.xlu0 %119  ;;  %v280_v51 = vmul.f32 %v370_v21, %v278_v38 }
  0xa5   :  { %v124_v13 = vsel %vm123_vm6, %v120_v9, %v122_v8  ;;  %v125_v14 = vsel %vm123_vm6, %v122_v8, %v120_v9  ;;  %v33_v8 = vpack.c.bf16 %v32_v4, %v32_v4 }
  0xa6   :  { %v128_v28 = vcombine.low %v124_v13, %v125_v14  ;;  %v281_v61 = vadd.f32 %v280_v51, %v269_v53 }
  0xa8   :  { %v285_v29 = vpop.permute.xlu1 %284  ;;  %v283_v30 = vpop.permute.xlu0 %282  ;;  %v130_v42 = vmul.f32 %v371_v32, %v128_v28 }
  0xa9   :  { %v286_v33 = vsel %vm123_vm6, %v283_v30, %v285_v29  ;;  %v287_v34 = vsel %vm123_vm6, %v285_v29, %v283_v30 }
  0xaa   :  { %v290_v43 = vcombine.low %v286_v33, %v287_v34  ;;  %v131_v58 = vadd.f32 %v130_v42, %v118_v50 }
  0xac   :  { %v135_v44 = vpop.permute.xlu1 %134  ;;  %v133_v45 = vpop.permute.xlu0 %132  ;;  %v292_v54 = vmul.f32 %v371_v32, %v290_v43 }
  0xad   :  { %v137_v47 = vsel %vm136_vm7, %v133_v45, %v135_v44  ;;  %v138_v48 = vsel %vm136_vm7, %v135_v44, %v133_v45 }
  0xae   :  { %v141_v52 = vcombine.low %v137_v47, %v138_v48  ;;  %v293_v3 = vadd.f32 %v292_v54, %v281_v61 }
  0xb0   :  { %v143_v55 = vmul.f32 %v372_v46, %v141_v52  ;;  %v297_v56 = vpop.permute.xlu1 %296  ;;  %v295_v57 = vpop.permute.xlu0 %294 }
  0xb1   :  { %v298_v59 = vsel %vm136_vm7, %v295_v57, %v297_v56  ;;  %v299_v60 = vsel %vm136_vm7, %v297_v56, %v295_v57 }
  0xb2   :  { %v302_v62 = vcombine.low %v298_v59, %v299_v60  ;;  %v144_v63 = vadd.f32 %v143_v55, %v131_v58 }
  0xb4   :  { %v304_v0 = vmul.f32 %v372_v46, %v302_v62  ;;  %v146_v1 = vcombine.high %v144_v63, %v144_v63  ;;  %v148_v2 = vpack.c.bf16 %v144_v63, %v144_v63 }
  0xb6   :  { %v149_v5 = vpack.c.bf16 %v146_v1, %v146_v1  ;;  %v305_v6 = vadd.f32 %v304_v0, %v293_v3  ;;  %v156_v7 = vsel %vm154_vm8, %v148_v2, 0 }
  0xb8   :  { %373 = vmatprep.subr.msk.bf16.mxu0 %vm154_vm8, %v149_v5  ;;  %v307_v9 = vcombine.high %v305_v6, %v305_v6  ;;  %v309_v22 = vpack.c.bf16 %v305_v6, %v305_v6 }
  0xb9   :  { %176 = vmatpush1.bf16.msra.mxu0 %v156_v7 }
  0xba   :  { %v310_v10 = vpack.c.bf16 %v307_v9, %v307_v9  ;;  %v312_v11 = vsel %vm154_vm8, %v309_v22, 0 }
  0xbc   :  { %374 = vmatmul.mubr.msk.bf16.vlgmr.msra.gmra.mxu0 %vm150_vm9, %v33_v8  ;;  %376 = vmatprep.subr.msk.bf16.mxu1 %vm154_vm8, %v310_v10 }
  0xbd   :  { %332 = vmatpush1.bf16.msra.mxu1 %v312_v11 }
  0xc0   :  { %377 = vmatmul.mubr.msk.bf16.vlgmr.msra.gmra.mxu1 %vm150_vm9, %v33_v8 }
 0x17c   :  { %v195_v12 = vpop.f32.mrf.mxu0 }
 0x17d   :  { %202 = vst [vmem:[%s563_s3] sm:$0xff] %v195_v12 }
 0x17e   :  { %v197_v13 = vpop.f32.mrf.mxu0 }
 0x17f   :  { %203 = vst [vmem:[%s563_s3 + $0x8] sm:$0xff] %v197_v13 }
 0x180   :  { %v199_v14 = vpop.f32.mrf.mxu0  ;;  %v351_v15 = vpop.f32.mrf.mxu1 }
 0x181   :  { %378 = vst [vmem:[%s563_s3 + $0x10] sm:$0xff] %v351_v15 }
 0x182   :  { %v200_v16 = vpop.f32.mrf.mxu0  ;;  %v353_v17 = vpop.f32.mrf.mxu1 }
 0x183   :  { %379 = vst [vmem:[%s563_s3 + $0x18] sm:$0xff] %v353_v17 }
 0x184   :  { %v355_v18 = vpop.f32.mrf.mxu1 }
 0x186   :  { %v356_v19 = vpop.f32.mrf.mxu1 }

</bundles_post_ra>
